<compile_context>
chip_gen: v5e
topology: v5e:2x2
jax: 0.10.0
libtpu: 0.0.40
codegen_flags: <defaults>
</compile_context>

<pallas_src>
import functools

import jax
import jax.numpy as jnp
from jax.experimental import pallas as pl
from jax.experimental.pallas import tpu as pltpu


# ---------------------------------------------------------------------------
# Fused kernel: gating + top-k (expert tile 0) + per-expert-tile SwiGLU MLP
# with weighted accumulation into a VMEM f32 accumulator.
# ---------------------------------------------------------------------------
def moe_fused_kernel(
    x_ref,       # (TT, H)   f32  token tile
    wg_ref,      # (H, E)    bf16 gating weight
    bg_ref,      # (1, E)    f32  gating bias
    gw_ref,      # (H, NI)   bf16 gate-proj weights of this expert tile
    gb_ref,      # (1, NI)   f32  gate-proj biases
    uw_ref,      # (H, NI)   bf16 up-proj weights
    ub_ref,      # (1, NI)   f32  up-proj biases
    dw_ref,      # (NI, H)   bf16 down-proj weights of this expert tile
    db_ref,      # (E, H)    f32  down-proj biases of ALL experts
    exp_ref,     # (E, NI)   bf16 0/1 combine->lane expansion for this tile
    out_ref,     # (TT, H)        output
    logits_ref,  # (TT, E)   f32  gating logits output
    comb_ref,    # (TT, E)   f32  scratch: top-k combine weights
    acc_ref,     # (TT, H)   f32  scratch: output accumulator
    *, topk,
):
    e_idx = pl.program_id(1)
    xb = x_ref[...].astype(jnp.bfloat16)            # bf16 MXU operand, f32 accum

    # ---- gating, top-k routing and accumulator init (once per token tile) ---
    @pl.when(e_idx == 0)
    def _gate_and_init():
        logits = (jnp.dot(xb, wg_ref[...], preferred_element_type=jnp.float32)
                  + bg_ref[...])
        logits_ref[...] = logits
        T, E = logits.shape
        # top-k selection (unrolled; lowest-index tie-break, like lax.top_k)
        col = jax.lax.broadcasted_iota(jnp.int32, (T, E), 1)
        work = logits
        selected = jnp.zeros((T, E), dtype=jnp.bool_)
        for _ in range(topk):
            mx = jnp.max(work, axis=-1, keepdims=True)
            amin = jnp.min(jnp.where(work == mx, col, E), axis=-1, keepdims=True)
            sel_k = col == amin
            selected = jnp.logical_or(selected, sel_k)
            work = jnp.where(sel_k, -jnp.inf, work)
        combine = jnp.where(selected, logits, 0.0)   # raw-logit combine weights
        comb_ref[...] = combine
        # fold all per-expert down biases:  acc = sum_e combine[t,e] * db[e]
        acc_ref[...] = jnp.dot(combine, db_ref[...],
                               preferred_element_type=jnp.float32)

    # ---- this expert tile: gate / up / silu / weighted down -----------------
    g = jnp.dot(xb, gw_ref[...], preferred_element_type=jnp.float32) + gb_ref[...]
    u = jnp.dot(xb, uw_ref[...], preferred_element_type=jnp.float32) + ub_ref[...]
    # silu(g) * u ; the divide goes to the EUP via approx reciprocal
    h = g * pl.reciprocal(1.0 + jnp.exp(-g), approx=True) * u        # f32

    # broadcast combine[t, e] over expert e's I-wide lane slice with a small
    # MXU matmul against the precomputed 0/1 expansion matrix.
    comb_rep = jnp.dot(comb_ref[...].astype(jnp.bfloat16), exp_ref[...],
                       preferred_element_type=jnp.float32)            # (TT, NI)

    acc_ref[...] += jnp.dot((h * comb_rep).astype(jnp.bfloat16), dw_ref[...],
                            preferred_element_type=jnp.float32)

    # ---- finalize (last expert tile) ----------------------------------------
    @pl.when(e_idx == pl.num_programs(1) - 1)
    def _finalize():
        out_ref[...] = acc_ref[...].astype(out_ref.dtype)


# ---------------------------------------------------------------------------
# One-time weight preparation (outside the jitted forward: no per-call glue).
# ---------------------------------------------------------------------------
def prepare_params(params):
    gw, gb = params["gw"], params["gb"]              # (E, H, I), (E, I)
    uw, ub = params["uw"], params["ub"]
    dw, db = params["dw"], params["db"]              # (E, I, H), (E, H)
    E, H, I = gw.shape
    bf = jnp.bfloat16
    # 0/1 expansion: row e has ones on columns [e*I, (e+1)*I)
    expand = (jnp.arange(E)[:, None] == (jnp.arange(E * I) // I)[None, :]).astype(bf)
    return dict(
        wg=params["wg"].astype(bf),                              # (H, E)
        bg=params["bg"].reshape(1, E).astype(jnp.float32),       # (1, E)
        gwf=jnp.transpose(gw, (1, 0, 2)).reshape(H, E * I).astype(bf),  # (H, E*I)
        gbf=gb.reshape(1, E * I).astype(jnp.float32),            # (1, E*I)
        uwf=jnp.transpose(uw, (1, 0, 2)).reshape(H, E * I).astype(bf),  # (H, E*I)
        ubf=ub.reshape(1, E * I).astype(jnp.float32),            # (1, E*I)
        dwf=dw.reshape(E * I, H).astype(bf),                     # (E*I, H)
        dbf=db.astype(jnp.float32),                              # (E, H)
        expand=expand,                                           # (E, E*I)
    )


# ---------------------------------------------------------------------------
# Tiling heuristics
# ---------------------------------------------------------------------------
def _vmem_capacity_bytes():
    try:
        return int(pltpu.get_tpu_info().vmem_capacity_bytes)
    except Exception:
        return 64 * 1024 * 1024   # conservative (v7x per-TC VMEM)


def _pick_token_tile(T):
    # MXU-shaped token tiles (128/256); fall back only for tiny T.
    for tt in (256, 128, 64, 32, 16, 8):
        if T % tt == 0:
            return tt
    return T   # full dim (satisfies the (8,128)-or-full rule)


def _pick_expert_tile(E, I, H, TT, budget_bytes):
    # Largest divisor of E whose per-step blocks fit the VMEM budget and keep
    # the lane dim a multiple of 128 (or the full dim).
    cands = [d for d in range(E, 0, -1)
             if E % d == 0 and ((d * I) % 128 == 0 or d == E)]
    for et in cands:
        n = et * I
        weights = 2 * 2 * (2 * H * n + n * H + E * n)   # bf16, double-buffered
        interm = 4 * 4 * TT * n                         # g, u, h, comb_rep (f32)
        if weights + interm <= budget_bytes:
            return et
    return cands[-1] if cands else E


# ---------------------------------------------------------------------------
# Wrapper
# ---------------------------------------------------------------------------
def moe_forward(x, fparams, *, topk, token_tile=None, expert_tile=None):
    """Returns (final_outputs, gate_logit), matching the PyTorch MOE.forward."""
    B, S, H = x.shape
    E = fparams["wg"].shape[1]
    I = fparams["gwf"].shape[1] // E
    T = B * S
    xf = x.reshape(T, H)

    vmem_limit = (_vmem_capacity_bytes() * 3) // 4      # 48 MiB v7x / 96 MiB v5e,v6e
    TT = token_tile if token_tile is not None else _pick_token_tile(T)
    ET = expert_tile if expert_tile is not None else _pick_expert_tile(
        E, I, H, TT, vmem_limit // 2)
    assert T % TT == 0 and E % ET == 0
    NI = ET * I
    grid = (T // TT, E // ET)

    kernel = functools.partial(moe_fused_kernel, topk=topk)

    out, logits = pl.pallas_call(
        kernel,
        out_shape=(jax.ShapeDtypeStruct((T, H), x.dtype),
                   jax.ShapeDtypeStruct((T, E), jnp.float32)),
        grid_spec=pltpu.PrefetchScalarGridSpec(
            num_scalar_prefetch=0,
            grid=grid,
            in_specs=[
                pl.BlockSpec((TT, H), lambda t, e: (t, 0)),    # x tile
                pl.BlockSpec((H, E), lambda t, e: (0, 0)),     # gating W (bf16)
                pl.BlockSpec((1, E), lambda t, e: (0, 0)),     # gating b (f32)
                pl.BlockSpec((H, NI), lambda t, e: (0, e)),    # gate-proj W tile
                pl.BlockSpec((1, NI), lambda t, e: (0, e)),    # gate-proj b tile
                pl.BlockSpec((H, NI), lambda t, e: (0, e)),    # up-proj W tile
                pl.BlockSpec((1, NI), lambda t, e: (0, e)),    # up-proj b tile
                pl.BlockSpec((NI, H), lambda t, e: (e, 0)),    # down-proj W tile
                pl.BlockSpec((E, H), lambda t, e: (0, 0)),     # down-proj biases
                pl.BlockSpec((E, NI), lambda t, e: (0, e)),    # expand tile
            ],
            out_specs=(
                pl.BlockSpec((TT, H), lambda t, e: (t, 0)),    # out (accumulated)
                pl.BlockSpec((TT, E), lambda t, e: (t, 0)),    # gating logits
            ),
            scratch_shapes=[
                pltpu.VMEM((TT, E), jnp.float32),   # combine weights
                pltpu.VMEM((TT, H), jnp.float32),   # f32 output accumulator
            ],
        ),
        compiler_params=pltpu.CompilerParams(
            dimension_semantics=("parallel", "arbitrary"),
            vmem_limit_bytes=vmem_limit,
        ),
    )(xf, fparams["wg"], fparams["bg"], fparams["gwf"], fparams["gbf"],
      fparams["uwf"], fparams["ubf"], fparams["dwf"], fparams["dbf"],
      fparams["expand"])

    return out.reshape(B, S, H), logits


# ---------------------------------------------------------------------------
# Pure-JAX reference (mirrors the PyTorch module with the same bf16-operand /
# f32-accumulation precision policy as the kernel) for the correctness check.
# ---------------------------------------------------------------------------
def moe_reference(x, params, *, topk):
    bf = jnp.bfloat16
    B, S, H = x.shape
    E = params["wg"].shape[1]
    xf = x.reshape(-1, H)
    xb = xf.astype(bf)
    logits = jnp.dot(xb, params["wg"].astype(bf),
                     preferred_element_type=jnp.float32) + params["bg"]
    _, top_idx = jax.lax.top_k(logits, topk)
    selected = jax.nn.one_hot(top_idx, E, dtype=jnp.bool_).any(axis=1)
    combine = jnp.where(selected, logits, 0.0)
    out = jnp.zeros_like(xf)
    for e in range(E):
        g = jnp.dot(xb, params["gw"][e].astype(bf),
                    preferred_element_type=jnp.float32) + params["gb"][e]
        u = jnp.dot(xb, params["uw"][e].astype(bf),
                    preferred_element_type=jnp.float32) + params["ub"][e]
        h = jax.nn.silu(g) * u
        o = jnp.dot(h.astype(bf), params["dw"][e].astype(bf),
                    preferred_element_type=jnp.float32) + params["db"][e]
        out = out + o * combine[:, e:e + 1]
    return out.reshape(B, S, H), logits


# ---------------------------------------------------------------------------
def init_params(key, *, hidden, intermediate, n_experts):
    ks = jax.random.split(key, 8)
    s_h = 1.0 / jnp.sqrt(hidden)
    s_i = 1.0 / jnp.sqrt(intermediate)
    return dict(
        wg=jax.random.uniform(ks[0], (hidden, n_experts), jnp.float32, -s_h, s_h),
        bg=jax.random.uniform(ks[1], (n_experts,), jnp.float32, -s_h, s_h),
        gw=jax.random.uniform(ks[2], (n_experts, hidden, intermediate), jnp.float32, -s_h, s_h),
        gb=jax.random.uniform(ks[3], (n_experts, intermediate), jnp.float32, -s_h, s_h),
        uw=jax.random.uniform(ks[4], (n_experts, hidden, intermediate), jnp.float32, -s_h, s_h),
        ub=jax.random.uniform(ks[5], (n_experts, intermediate), jnp.float32, -s_h, s_h),
        dw=jax.random.uniform(ks[6], (n_experts, intermediate, hidden), jnp.float32, -s_i, s_i),
        db=jax.random.uniform(ks[7], (n_experts, hidden), jnp.float32, -s_i, s_i),
    )


if __name__ == "__main__":
    # config: hidden_size=32, intermediate_size=64, expert_num=8, topk=2, mlp_bias=True
    B, S, H, I, E, TOPK = 2, 8, 32, 64, 8, 2

    key = jax.random.PRNGKey(0)
    k_x, k_p = jax.random.split(key)
    x = jax.random.normal(k_x, (B, S, H), dtype=jnp.float32)
    params = init_params(k_p, hidden=H, intermediate=I, n_experts=E)
    fparams = prepare_params(params)   # one-time weight fusion / bf16 cast

    out_ref, logit_ref = moe_reference(x, params, topk=TOPK)

    # Default tiling (weights resident, single expert tile at this tiny size).
    fwd = jax.jit(functools.partial(moe_forward, topk=TOPK))
    out, gate_logit = fwd(x, fparams)
    jax.block_until_ready((out, gate_logit))

    assert out.shape == x.shape and gate_logit.shape == (B * S, E)
    assert jnp.allclose(gate_logit, logit_ref, rtol=1e-3, atol=1e-4)
    assert jnp.allclose(out, out_ref, rtol=2e-2, atol=2e-2)

    # Also exercise the multi-tile path (parallel token axis + expert-axis
    # accumulation with pl.when init/finalize), as used at real MoE sizes.
    fwd2 = jax.jit(functools.partial(moe_forward, topk=TOPK,
                                     token_tile=8, expert_tile=2))
    out2, gate_logit2 = fwd2(x, fparams)
    jax.block_until_ready((out2, gate_logit2))
    assert jnp.allclose(gate_logit2, logit_ref, rtol=1e-3, atol=1e-4)
    assert jnp.allclose(out2, out_ref, rtol=2e-2, atol=2e-2)

    print("KERNEL_OK")
</pallas_src>

<mosaic_0001>
module attributes {stable_mosaic.version = 11 : i64} {
  func.func @moe_fused_kernel(%arg0: i32, %arg1: i32, %arg2: memref<16x32xf32, #tpu.memory_space<vmem>>, %arg3: memref<32x8xbf16, #tpu.memory_space<vmem>>, %arg4: memref<1x8xf32, #tpu.memory_space<vmem>>, %arg5: memref<32x512xbf16, #tpu.memory_space<vmem>>, %arg6: memref<1x512xf32, #tpu.memory_space<vmem>>, %arg7: memref<32x512xbf16, #tpu.memory_space<vmem>>, %arg8: memref<1x512xf32, #tpu.memory_space<vmem>>, %arg9: memref<512x32xbf16, #tpu.memory_space<vmem>>, %arg10: memref<8x32xf32, #tpu.memory_space<vmem>>, %arg11: memref<8x512xbf16, #tpu.memory_space<vmem>>, %arg12: memref<16x32xf32, #tpu.memory_space<vmem>>, %arg13: memref<16x8xf32, #tpu.memory_space<vmem>>, %arg14: memref<16x8xf32, #tpu.memory_space<vmem>>, %arg15: memref<16x32xf32, #tpu.memory_space<vmem>>) attributes {dimension_semantics = [#tpu.dimension_semantics<parallel>, #tpu.dimension_semantics<arbitrary>], iteration_bounds = array<i64: 1, 1>, scalar_prefetch = 0 : i64, scratch_operands = 2 : i64, tpu.core_type = #tpu.core_type<tc>, window_params = [{transform_indices = @transform_0, window_bounds = array<i64: 16, 32>}, {pipeline_mode = #tpu.pipeline_mode<synchronous>, transform_indices = @transform_1, window_bounds = array<i64: 32, 8>}, {pipeline_mode = #tpu.pipeline_mode<synchronous>, transform_indices = @transform_2, window_bounds = array<i64: 1, 8>}, {transform_indices = @transform_3, window_bounds = array<i64: 32, 512>}, {transform_indices = @transform_4, window_bounds = array<i64: 1, 512>}, {transform_indices = @transform_5, window_bounds = array<i64: 32, 512>}, {transform_indices = @transform_6, window_bounds = array<i64: 1, 512>}, {transform_indices = @transform_7, window_bounds = array<i64: 512, 32>}, {pipeline_mode = #tpu.pipeline_mode<synchronous>, transform_indices = @transform_8, window_bounds = array<i64: 8, 32>}, {transform_indices = @transform_9, window_bounds = array<i64: 8, 512>}, {transform_indices = @transform_10, window_bounds = array<i64: 16, 32>}, {transform_indices = @transform_11, window_bounds = array<i64: 16, 8>}]} {
    %c0 = arith.constant 0 : index
    %c0_0 = arith.constant 0 : index
    %0 = vector.load %arg2[%c0, %c0_0] : memref<16x32xf32, #tpu.memory_space<vmem>>, vector<16x32xf32>
    %1 = arith.truncf %0 : vector<16x32xf32> to vector<16x32xbf16>
    %c0_i32 = arith.constant 0 : i32
    %2 = arith.cmpi eq, %arg1, %c0_i32 : i32
    %3 = arith.extui %2 : i1 to i32
    %c0_i32_1 = arith.constant 0 : i32
    %4 = arith.cmpi ne, %3, %c0_i32_1 : i32
    scf.if %4 {
      %c0_27 = arith.constant 0 : index
      %c0_28 = arith.constant 0 : index
      %37 = vector.load %arg3[%c0_27, %c0_28] : memref<32x8xbf16, #tpu.memory_space<vmem>>, vector<32x8xbf16>
      %cst_29 = arith.constant dense<0.000000e+00> : vector<16x8xf32>
      %38 = tpu.matmul %1, %37, %cst_29 {dimension_numbers = #tpu.dot_dimension_numbers<[1], [0], [0], [1], [0, 0, 1, 1], [], []>} : vector<16x32xbf16>, vector<32x8xbf16>, vector<16x8xf32> -> vector<16x8xf32>
      %c0_30 = arith.constant 0 : index
      %c0_31 = arith.constant 0 : index
      %39 = vector.load %arg4[%c0_30, %c0_31] : memref<1x8xf32, #tpu.memory_space<vmem>>, vector<1x8xf32>
      %40 = vector.broadcast %39 : vector<1x8xf32> to vector<16x8xf32>
      %41 = arith.addf %38, %40 : vector<16x8xf32>
      %c0_32 = arith.constant 0 : index
      %c0_33 = arith.constant 0 : index
      %42 = vector.load %arg13[%c0_32, %c0_33] : memref<16x8xf32, #tpu.memory_space<vmem>>, vector<16x8xf32>
      tpu.vector_store %arg13[%c0_32, %c0_33], %41 {strides = array<i32>} : memref<16x8xf32, #tpu.memory_space<vmem>>, vector<16x8xf32>,
      %43 = tpu.iota {dimensions = array<i32: 1>} : vector<16x8xi32>
      %false = arith.constant false
      %44 = vector.broadcast %false : i1 to vector<16x8xi1>
      %cst_34 = arith.constant dense<0xFF800000> : vector<16xf32>
      %45 = vector.multi_reduction <maximumf>, %41, %cst_34 [1] : vector<16x8xf32> to vector<16xf32>
      %46 = vector.shape_cast %45 : vector<16xf32> to vector<16x1xf32>
      %47 = vector.broadcast %46 : vector<16x1xf32> to vector<16x8xf32>
      %48 = arith.cmpf oeq, %41, %47 : vector<16x8xf32>
      %c8_i32 = arith.constant 8 : i32
      %49 = vector.broadcast %c8_i32 : i32 to vector<16x8xi32>
      %50 = arith.select %48, %43, %49 : vector<16x8xi1>, vector<16x8xi32>
      %cst_35 = arith.constant dense<2147483647> : vector<16xi32>
      %51 = vector.multi_reduction <minsi>, %50, %cst_35 [1] : vector<16x8xi32> to vector<16xi32>
      %52 = vector.shape_cast %51 : vector<16xi32> to vector<16x1xi32>
      %53 = vector.broadcast %52 : vector<16x1xi32> to vector<16x8xi32>
      %54 = arith.cmpi eq, %43, %53 : vector<16x8xi32>
      %55 = arith.ori %44, %54 : vector<16x8xi1>
      %cst_36 = arith.constant 0xFF800000 : f32
      %56 = vector.broadcast %cst_36 : f32 to vector<16x8xf32>
      %57 = arith.select %54, %56, %41 : vector<16x8xi1>, vector<16x8xf32>
      %cst_37 = arith.constant dense<0xFF800000> : vector<16xf32>
      %58 = vector.multi_reduction <maximumf>, %57, %cst_37 [1] : vector<16x8xf32> to vector<16xf32>
      %59 = vector.shape_cast %58 : vector<16xf32> to vector<16x1xf32>
      %60 = vector.broadcast %59 : vector<16x1xf32> to vector<16x8xf32>
      %61 = arith.cmpf oeq, %57, %60 : vector<16x8xf32>
      %c8_i32_38 = arith.constant 8 : i32
      %62 = vector.broadcast %c8_i32_38 : i32 to vector<16x8xi32>
      %63 = arith.select %61, %43, %62 : vector<16x8xi1>, vector<16x8xi32>
      %cst_39 = arith.constant dense<2147483647> : vector<16xi32>
      %64 = vector.multi_reduction <minsi>, %63, %cst_39 [1] : vector<16x8xi32> to vector<16xi32>
      %65 = vector.shape_cast %64 : vector<16xi32> to vector<16x1xi32>
      %66 = vector.broadcast %65 : vector<16x1xi32> to vector<16x8xi32>
      %67 = arith.cmpi eq, %43, %66 : vector<16x8xi32>
      %68 = arith.ori %55, %67 : vector<16x8xi1>
      %cst_40 = arith.constant 0.000000e+00 : f32
      %69 = vector.broadcast %cst_40 : f32 to vector<16x8xf32>
      %70 = arith.select %68, %41, %69 : vector<16x8xi1>, vector<16x8xf32>
      %c0_41 = arith.constant 0 : index
      %c0_42 = arith.constant 0 : index
      %71 = vector.load %arg14[%c0_41, %c0_42] : memref<16x8xf32, #tpu.memory_space<vmem>>, vector<16x8xf32>
      tpu.vector_store %arg14[%c0_41, %c0_42], %70 {strides = array<i32>} : memref<16x8xf32, #tpu.memory_space<vmem>>, vector<16x8xf32>,
      %c0_43 = arith.constant 0 : index
      %c0_44 = arith.constant 0 : index
      %72 = vector.load %arg10[%c0_43, %c0_44] : memref<8x32xf32, #tpu.memory_space<vmem>>, vector<8x32xf32>
      %cst_45 = arith.constant dense<0.000000e+00> : vector<16x32xf32>
      %73 = tpu.matmul %70, %72, %cst_45 {dimension_numbers = #tpu.dot_dimension_numbers<[1], [0], [0], [1], [0, 0, 1, 1], [], []>} : vector<16x8xf32>, vector<8x32xf32>, vector<16x32xf32> -> vector<16x32xf32>
      %c0_46 = arith.constant 0 : index
      %c0_47 = arith.constant 0 : index
      %74 = vector.load %arg15[%c0_46, %c0_47] : memref<16x32xf32, #tpu.memory_space<vmem>>, vector<16x32xf32>
      tpu.vector_store %arg15[%c0_46, %c0_47], %73 {strides = array<i32>} : memref<16x32xf32, #tpu.memory_space<vmem>>, vector<16x32xf32>,
    } else {
    }
    %c0_2 = arith.constant 0 : index
    %c0_3 = arith.constant 0 : index
    %5 = vector.load %arg5[%c0_2, %c0_3] : memref<32x512xbf16, #tpu.memory_space<vmem>>, vector<32x512xbf16>
    %cst = arith.constant dense<0.000000e+00> : vector<16x512xf32>
    %6 = tpu.matmul %1, %5, %cst {dimension_numbers = #tpu.dot_dimension_numbers<[1], [0], [0], [1], [0, 0, 1, 1], [], []>} : vector<16x32xbf16>, vector<32x512xbf16>, vector<16x512xf32> -> vector<16x512xf32>
    %c0_4 = arith.constant 0 : index
    %c0_5 = arith.constant 0 : index
    %7 = vector.load %arg6[%c0_4, %c0_5] : memref<1x512xf32, #tpu.memory_space<vmem>>, vector<1x512xf32>
    %8 = vector.broadcast %7 : vector<1x512xf32> to vector<16x512xf32>
    %9 = arith.addf %6, %8 : vector<16x512xf32>
    %c0_6 = arith.constant 0 : index
    %c0_7 = arith.constant 0 : index
    %10 = vector.load %arg7[%c0_6, %c0_7] : memref<32x512xbf16, #tpu.memory_space<vmem>>, vector<32x512xbf16>
    %cst_8 = arith.constant dense<0.000000e+00> : vector<16x512xf32>
    %11 = tpu.matmul %1, %10, %cst_8 {dimension_numbers = #tpu.dot_dimension_numbers<[1], [0], [0], [1], [0, 0, 1, 1], [], []>} : vector<16x32xbf16>, vector<32x512xbf16>, vector<16x512xf32> -> vector<16x512xf32>
    %c0_9 = arith.constant 0 : index
    %c0_10 = arith.constant 0 : index
    %12 = vector.load %arg8[%c0_9, %c0_10] : memref<1x512xf32, #tpu.memory_space<vmem>>, vector<1x512xf32>
    %13 = vector.broadcast %12 : vector<1x512xf32> to vector<16x512xf32>
    %14 = arith.addf %11, %13 : vector<16x512xf32>
    %cst_11 = arith.constant 0.000000e+00 : f32
    %15 = vector.broadcast %cst_11 : f32 to vector<16x512xf32>
    %16 = arith.subf %15, %9 : vector<16x512xf32>
    %17 = math.exp %16 : vector<16x512xf32>
    %cst_12 = arith.constant 1.000000e+00 : f32
    %18 = vector.broadcast %cst_12 : f32 to vector<16x512xf32>
    %19 = arith.addf %18, %17 : vector<16x512xf32>
    %20 = tpu.reciprocal %19 {approx = true} : vector<16x512xf32> -> vector<16x512xf32>
    %21 = arith.mulf %9, %20 : vector<16x512xf32>
    %22 = arith.mulf %21, %14 : vector<16x512xf32>
    %c0_13 = arith.constant 0 : index
    %c0_14 = arith.constant 0 : index
    %23 = vector.load %arg14[%c0_13, %c0_14] : memref<16x8xf32, #tpu.memory_space<vmem>>, vector<16x8xf32>
    %24 = arith.truncf %23 : vector<16x8xf32> to vector<16x8xbf16>
    %c0_15 = arith.constant 0 : index
    %c0_16 = arith.constant 0 : index
    %25 = vector.load %arg11[%c0_15, %c0_16] : memref<8x512xbf16, #tpu.memory_space<vmem>>, vector<8x512xbf16>
    %cst_17 = arith.constant dense<0.000000e+00> : vector<16x512xf32>
    %26 = tpu.matmul %24, %25, %cst_17 {dimension_numbers = #tpu.dot_dimension_numbers<[1], [0], [0], [1], [0, 0, 1, 1], [], []>} : vector<16x8xbf16>, vector<8x512xbf16>, vector<16x512xf32> -> vector<16x512xf32>
    %c0_18 = arith.constant 0 : index
    %c0_19 = arith.constant 0 : index
    %27 = vector.load %arg15[%c0_18, %c0_19] : memref<16x32xf32, #tpu.memory_space<vmem>>, vector<16x32xf32>
    %28 = arith.mulf %22, %26 : vector<16x512xf32>
    %29 = arith.truncf %28 : vector<16x512xf32> to vector<16x512xbf16>
    %c0_20 = arith.constant 0 : index
    %c0_21 = arith.constant 0 : index
    %30 = vector.load %arg9[%c0_20, %c0_21] : memref<512x32xbf16, #tpu.memory_space<vmem>>, vector<512x32xbf16>
    %cst_22 = arith.constant dense<0.000000e+00> : vector<16x32xf32>
    %31 = tpu.matmul %29, %30, %cst_22 {dimension_numbers = #tpu.dot_dimension_numbers<[1], [0], [0], [1], [0, 0, 1, 1], [], []>} : vector<16x512xbf16>, vector<512x32xbf16>, vector<16x32xf32> -> vector<16x32xf32>
    %32 = arith.addf %27, %31 : vector<16x32xf32>
    %c0_23 = arith.constant 0 : index
    %c0_24 = arith.constant 0 : index
    %33 = vector.load %arg15[%c0_23, %c0_24] : memref<16x32xf32, #tpu.memory_space<vmem>>, vector<16x32xf32>
    tpu.vector_store %arg15[%c0_23, %c0_24], %32 {strides = array<i32>} : memref<16x32xf32, #tpu.memory_space<vmem>>, vector<16x32xf32>,
    %c0_i32_25 = arith.constant 0 : i32
    %34 = arith.cmpi eq, %arg1, %c0_i32_25 : i32
    %35 = arith.extui %34 : i1 to i32
    %c0_i32_26 = arith.constant 0 : i32
    %36 = arith.cmpi ne, %35, %c0_i32_26 : i32
    scf.if %36 {
      %c0_27 = arith.constant 0 : index
      %c0_28 = arith.constant 0 : index
      %37 = vector.load %arg15[%c0_27, %c0_28] : memref<16x32xf32, #tpu.memory_space<vmem>>, vector<16x32xf32>
      %c0_29 = arith.constant 0 : index
      %c0_30 = arith.constant 0 : index
      %38 = vector.load %arg12[%c0_29, %c0_30] : memref<16x32xf32, #tpu.memory_space<vmem>>, vector<16x32xf32>
      tpu.vector_store %arg12[%c0_29, %c0_30], %37 {strides = array<i32>} : memref<16x32xf32, #tpu.memory_space<vmem>>, vector<16x32xf32>,
    } else {
    }
    return
  }
  func.func @transform_0(%arg0: i32, %arg1: i32) -> (i32, i32) {
    %c0_i32 = arith.constant 0 : i32
    %c0_i32_0 = arith.constant 0 : i32
    return %arg0, %c0_i32 : i32, i32
  }
  func.func @transform_1(%arg0: i32, %arg1: i32) -> (i32, i32) {
    %c0_i32 = arith.constant 0 : i32
    %c0_i32_0 = arith.constant 0 : i32
    %c0_i32_1 = arith.constant 0 : i32
    return %c0_i32, %c0_i32_0 : i32, i32
  }
  func.func @transform_2(%arg0: i32, %arg1: i32) -> (i32, i32) {
    %c0_i32 = arith.constant 0 : i32
    %c0_i32_0 = arith.constant 0 : i32
    %c0_i32_1 = arith.constant 0 : i32
    return %c0_i32, %c0_i32_0 : i32, i32
  }
  func.func @transform_3(%arg0: i32, %arg1: i32) -> (i32, i32) {
    %c0_i32 = arith.constant 0 : i32
    %c0_i32_0 = arith.constant 0 : i32
    return %c0_i32, %arg1 : i32, i32
  }
  func.func @transform_4(%arg0: i32, %arg1: i32) -> (i32, i32) {
    %c0_i32 = arith.constant 0 : i32
    %c0_i32_0 = arith.constant 0 : i32
    return %c0_i32, %arg1 : i32, i32
  }
  func.func @transform_5(%arg0: i32, %arg1: i32) -> (i32, i32) {
    %c0_i32 = arith.constant 0 : i32
    %c0_i32_0 = arith.constant 0 : i32
    return %c0_i32, %arg1 : i32, i32
  }
  func.func @transform_6(%arg0: i32, %arg1: i32) -> (i32, i32) {
    %c0_i32 = arith.constant 0 : i32
    %c0_i32_0 = arith.constant 0 : i32
    return %c0_i32, %arg1 : i32, i32
  }
  func.func @transform_7(%arg0: i32, %arg1: i32) -> (i32, i32) {
    %c0_i32 = arith.constant 0 : i32
    %c0_i32_0 = arith.constant 0 : i32
    return %arg1, %c0_i32 : i32, i32
  }
  func.func @transform_8(%arg0: i32, %arg1: i32) -> (i32, i32) {
    %c0_i32 = arith.constant 0 : i32
    %c0_i32_0 = arith.constant 0 : i32
    %c0_i32_1 = arith.constant 0 : i32
    return %c0_i32, %c0_i32_0 : i32, i32
  }
  func.func @transform_9(%arg0: i32, %arg1: i32) -> (i32, i32) {
    %c0_i32 = arith.constant 0 : i32
    %c0_i32_0 = arith.constant 0 : i32
    return %c0_i32, %arg1 : i32, i32
  }
  func.func @transform_10(%arg0: i32, %arg1: i32) -> (i32, i32) {
    %c0_i32 = arith.constant 0 : i32
    %c0_i32_0 = arith.constant 0 : i32
    return %arg0, %c0_i32 : i32, i32
  }
  func.func @transform_11(%arg0: i32, %arg1: i32) -> (i32, i32) {
    %c0_i32 = arith.constant 0 : i32
    %c0_i32_0 = arith.constant 0 : i32
    return %arg0, %c0_i32 : i32, i32
  }
}

</mosaic_0001>

<bundles_post_ra>
// kernel: moe_forward.1
= control target key start
LH: loop header
LB: loop body
LE: loop exit
PB: predicated region body
PF: predicated region fallthrough
CT: control target
= control target key end

     0   :  { %s1706_s0 = inlined_call_operand.vmem [shape: f32[16,32], index: 0, kind: input, shape index: {}]   ;;  %s1707_s1 = inlined_call_operand.vmem [shape: bf16[32,8], index: 1, kind: input, shape index: {}]   ;;  %s1708_s2 = inlined_call_operand.vmem [shape: f32[1,8], index: 2, kind: input, shape index: {}]   ;;  %s1709_s3 = inlined_call_operand.vmem [shape: bf16[32,512], index: 3, kind: input, shape index: {}]   ;;  %s1710_s4 = inlined_call_operand.vmem [shape: f32[1,512], index: 4, kind: input, shape index: {}]   ;;  %s1711_s5 = inlined_call_operand.vmem [shape: bf16[32,512], index: 5, kind: input, shape index: {}]   ;;  %s1712_s6 = inlined_call_operand.vmem [shape: f32[1,512], index: 6, kind: input, shape index: {}]   ;;  %s1713_s7 = inlined_call_operand.vmem [shape: bf16[512,32], index: 7, kind: input, shape index: {}]   ;;  %s1714_s8 = inlined_call_operand.vmem [shape: f32[8,32], index: 8, kind: input, shape index: {}]   ;;  %s1715_s9 = inlined_call_operand.vmem [shape: bf16[8,512], index: 9, kind: input, shape index: {}]   ;;  %s1716_s10 = inlined_call_operand.hbm [shape: f32[16,32], index: 10, kind: output, shape index: {0}]   ;;  %s1717_s11 = inlined_call_operand.vmem [shape: f32[16,8], index: 11, kind: output, shape index: {1}]  }
   0x1   :  { %v1164_v0 = vld [vmem:[%s1707_s1 + $0x8] sm:$0xff]  ;;  %v1163_v1 = vld [vmem:[%s1707_s1] sm:$0xff] }
   0x2   :  { %76 = vmatpush.bf16.msra.mxu0 %v1164_v0  ;;  %v39_v2 = vld [vmem:[%s1706_s0] sm:$0xff]  ;;  %v40_v3 = vld [vmem:[%s1706_s0 + $0x8] sm:$0xff] }
   0x3   :  { %17 = vsyncpa [#allocation5], 0  ;;  %v1350_v4 = vpack.c.bf16 %v40_v3, %v39_v2  ;;  %vm66_vm0 = vcmask 261120   ;;  %v1216_v5 = vld [vmem:[%s1708_s2] ss:$0 sm:$0xff]  ;;  %vm84_vm1 = vcmask 64512   ;;  %v87_v12 = vlaneseq }
   0x4   :  { %v977_v56 = vld [vmem:[%s1709_s3 + $0x20] sm:$0xf]  ;;  %v1171_v57 = vld [vmem:[%s1709_s3 + $0x2c] sm:$0xf0]  ;;  %v1169_v58 = vld [vmem:[%s1709_s3 + $0x24] sm:$0xf] }
   0x5   :  { %v1375_v13 = vand.u32 127, %v87_v12  ;;  %v978_v59 = vor.u32 %v1171_v57, %v977_v56  ;;  %v979_v60 = vld [vmem:[%s1709_s3 + $0x30] sm:$0xf0]  ;;  %v961_v61 = vld [vmem:[%s1709_s3] sm:$0xf]  ;;  %vm520_vm12 = vcmask 1043456  }
   0x6   :  { %77 = vmatpush.bf16.msra.mxu0 %v1163_v1  ;;  %v1167_v62 = vld [vmem:[%s1709_s3 + $0xc] sm:$0xf0]  ;;  %v982_v63 = vor.u32 %v1169_v58, %v979_v60  ;;  %v1165_v0 = vld [vmem:[%s1709_s3 + $0x4] sm:$0xf]  ;;  %v963_v1 = vld [vmem:[%s1709_s3 + $0x10] sm:$0xf0] }
   0x7   :  { %v1170_v2 = vld [vmem:[%s1709_s3 + $0x2c] sm:$0xf]  ;;  %281 = vmatpush.bf16.msra.mxu2 %v978_v59  ;;  %v962_v3 = vor.u32 %v1167_v62, %v961_v61  ;;  %v1013_v12 = vld [vmem:[%s1711_s5 + $0x20] sm:$0xf]  ;;  %s932_s18 = sshll.u32 %s1716_s10, 4  ;;  %s1276_s19 = smov 128   ;;  %s933_s18 = int_to_ptr.hbm [resolvable:$true] %s932_s18 }
   0x8   :  { %295 = vmatpush.bf16.msra.mxu3 %v982_v63  ;;  %s1277_s20 = smov 8  }
   0x9   :  { %956 = vmatmul.msk.bf16.vlgmr.msra.gmra.mxu0 %vm66_vm0, %v1350_v4 }
   0xb   :  { %282 = vmatpush.bf16.msra.mxu2 %v962_v3 }
   0xe   :  { %991 = vmatmul.msk.bf16.vlgmr.msra.gmra.mxu2 %vm66_vm0, %v1350_v4 }
  0x86   :  { %v79_v6 = vpop.f32.mrf.mxu0 }
  0x87   :  { %v1357_v7 = vadd.f32 %v1216_v5, %v79_v6  ;;  %v1166_v6 = vld [vmem:[%s1709_s3 + $0xc] sm:$0xf] }
  0x89   :  { %85 = vst.msk [vmem:[%s1717_s11] sm:$0xff] %vm84_vm1, %v1357_v7  ;;  %v89_v8 = vsel %vm84_vm1, %v1357_v7, -inf }
  0x8a   :  { %90 = vmax.xlane.f32.xlu0 %v89_v8  ;;  %v971_v8 = vld [vmem:[%s1709_s3 + $0x18] sm:$0xf0] }
  0x8e   :  { %v81_v9 = vpop.f32.mrf.mxu0 }
  0x8f   :  { %v1366_v10 = vadd.f32 %v1216_v5, %v81_v9  ;;  %v987_v5 = vld [vmem:[%s1709_s3 + $0x38] sm:$0xf0]  ;;  %v966_v9 = vor.u32 %v1165_v0, %v963_v1  ;;  %v1021_v0 = vld [vmem:[%s1711_s5 + $0x28] sm:$0xf]  ;;  %v1180_v1 = vld [vmem:[%s1711_s5 + $0x34] sm:$0xf0] }
  0x91   :  { %86 = vst.msk [vmem:[%s1717_s11 + $0x8] sm:$0xff] %vm84_vm1, %v1366_v10  ;;  %v92_v11 = vsel %vm84_vm1, %v1366_v10, -inf  ;;  %296 = vmatpush.bf16.msra.mxu3 %v966_v9 }
  0x92   :  { %93 = vmax.xlane.f32.xlu0 %v92_v11  ;;  %v990_v11 = vor.u32 %v1170_v2, %v987_v5  ;;  %v1022_v5 = vor.u32 %v1180_v1, %v1021_v0  ;;  %v1182_v1 = vld [vmem:[%s1713_s7 + $0x8] sm:$0xff] }
  0x94   :  { %323 = vmatpush.bf16.msrb.mxu0 %v990_v11  ;;  %992 = vmatmul.msk.bf16.vlgmr.msra.gmra.mxu3 %vm66_vm0, %v1350_v4 }
  0xfd   :  { %v91_v14 = vpop.xlane.xlu0 %90 }
  0xfe   :  { %vm95_vm2 = vcmp.eq.f32.partialorder %v1357_v7, %v91_v14  ;;  %v1179_v14 = vld [vmem:[%s1711_s5 + $0x2c] sm:$0xf0] }
  0xff   :  { %v97_v15 = vsel %vm95_vm2, %v1375_v13, 8 }
 0x100   :  { %v99_v16 = vsel %vm84_vm1, %v97_v15, 2147483647  ;;  %v1177_v15 = vld [vmem:[%s1711_s5 + $0x24] sm:$0xf] }
 0x101   :  { %v101_v17 = vshra.s32 %v99_v16, 16  ;;  %v100_v24 = vand.u32 65535, %v99_v16  ;;  %v1014_v16 = vor.u32 %v1179_v14, %v1013_v12 }
 0x103   :  { %v103_v18 = vcvt.s32.f32 %v101_v17  ;;  %v102_v26 = vcvt.s32.f32 %v100_v24  ;;  %v1015_v17 = vld [vmem:[%s1711_s5 + $0x30] sm:$0xf0]  ;;  %395 = vmatpush.bf16.msrb.mxu2 %v1014_v16 }
 0x105   :  { %104 = vmin.xlane.f32.xlu1 %v103_v18  ;;  %v94_v19 = vpop.xlane.xlu0 %93 }
 0x106   :  { %vm96_vm3 = vcmp.eq.f32.partialorder %v1366_v10, %v94_v19  ;;  %v1018_v19 = vor.u32 %v1177_v15, %v1015_v17 }
 0x107   :  { %v98_v20 = vsel %vm96_vm3, %v1375_v13, 8 }
 0x108   :  { %v114_v21 = vsel %vm84_vm1, %v98_v20, 2147483647  ;;  %409 = vmatpush.bf16.msrb.mxu3 %v1018_v19 }
 0x109   :  { %v116_v22 = vshra.s32 %v114_v21, 16  ;;  %v115_v28 = vand.u32 65535, %v114_v21 }
 0x10b   :  { %v118_v23 = vcvt.s32.f32 %v116_v22  ;;  %v117_v30 = vcvt.s32.f32 %v115_v28  ;;  %v997_v28 = vld [vmem:[%s1711_s5] sm:$0xf] }
 0x10d   :  { %119 = vmin.xlane.f32.xlu1 %v118_v23 }
 0x178   :  { %v105_v25 = vpop.xlane.xlu1 %104 }
 0x179   :  { %vm106_vm4 = vcmp.eq.f32.partialorder %v103_v18, %v105_v25  ;;  %v111_v32 = vcvt.f32.s32 %v105_v25  ;;  %v974_v18 = vor.u32 %v1166_v6, %v971_v8  ;;  %v1005_v6 = vld [vmem:[%s1711_s5 + $0x8] sm:$0xf]  ;;  %v1176_v8 = vld [vmem:[%s1711_s5 + $0x14] sm:$0xf0] }
 0x17a   :  { %v107_v27 = vsel %vm106_vm4, %v102_v26, inf }
 0x17b   :  { %108 = vmin.xlane.f32.xlu2 %v107_v27  ;;  %v112_v34 = vshll.u32 %v111_v32, 16  ;;  %324 = vmatpush.bf16.msrb.mxu0 %v974_v18  ;;  %v999_v32 = vld [vmem:[%s1711_s5 + $0x10] sm:$0xf0] }
 0x17e   :  { %994 = vmatmul.msk.bf16.vlgmr.msrb.gmra.mxu0 %vm66_vm0, %v1350_v4 }
 0x180   :  { %v120_v29 = vpop.xlane.xlu1 %119 }
 0x181   :  { %vm121_vm5 = vcmp.eq.f32.partialorder %v118_v23, %v120_v29  ;;  %v126_v37 = vcvt.f32.s32 %v120_v29  ;;  %v1175_v29 = vld [vmem:[%s1711_s5 + $0xc] sm:$0xf0] }
 0x182   :  { %v122_v31 = vsel %vm121_vm5, %v117_v30, inf  ;;  %v1173_v30 = vld [vmem:[%s1711_s5 + $0x4] sm:$0xf] }
 0x183   :  { %123 = vmin.xlane.f32.xlu2 %v122_v31  ;;  %v127_v41 = vshll.u32 %v126_v37, 16  ;;  %v998_v31 = vor.u32 %v1175_v29, %v997_v28  ;;  %v298_v28 = vpop.f32.mrf.mxu3  ;;  %v1186_v29 = vld [vmem:[%s1713_s7 + $0x28] sm:$0xff] }
 0x185   :  { %396 = vmatpush.bf16.msrb.mxu2 %v998_v31  ;;  %v1585_v31 = vld [vmem:[%s1710_s4] sm:$0xf] }
 0x188   :  { %1027 = vmatmul.msk.bf16.vlgmr.msrb.gmra.mxu2 %vm66_vm0, %v1350_v4 }
 0x1ee   :  { %v109_v33 = vpop.xlane.xlu2 %108 }
 0x1ef   :  { %v110_v35 = vcvt.f32.s32 %v109_v33  ;;  %v1002_v33 = vor.u32 %v1173_v30, %v999_v32  ;;  %v1194_v30 = vld [vmem:[%s1713_s7 + $0x68] sm:$0xff]  ;;  %v226_v32 = vperm.slane %v1585_v31, 3 }
 0x1f1   :  { %v1383_v36 = vadd.s32 %v112_v34, %v110_v35  ;;  %v1178_v34 = vld [vmem:[%s1711_s5 + $0x2c] sm:$0xf]  ;;  %v1023_v35 = vld [vmem:[%s1711_s5 + $0x38] sm:$0xf0]  ;;  %410 = vmatpush.bf16.msrb.mxu3 %v1002_v33 }
 0x1f2   :  { %v1026_v37 = vor.u32 %v1178_v34, %v1023_v35  ;;  %v1208_v33 = vld [vmem:[%s1713_s7 + $0xd8] sm:$0xff]  ;;  %v223_v34 = vperm.slane %v1585_v31, 0  ;;  %v1185_v35 = vld [vmem:[%s1713_s7 + $0x20] sm:$0xff] }
 0x1f3   :  { %vm129_vm6 = vcmp.eq.s32.totalorder %v1375_v13, %v1383_v36  ;;  %v1006_v36 = vor.u32 %v1176_v8, %v1005_v6 }
 0x1f4   :  { %v131_v38 = vsel %vm129_vm6, -inf, %v1357_v7  ;;  %437 = vmatpush.bf16.msra.mxu0 %v1026_v37  ;;  %1028 = vmatmul.msk.bf16.vlgmr.msrb.gmra.mxu3 %vm66_vm0, %v1350_v4  ;;  %v1193_v37 = vld [vmem:[%s1713_s7 + $0x60] sm:$0xff] }
 0x1f5   :  { %v133_v39 = vsel %vm84_vm1, %v131_v38, -inf }
 0x1f6   :  { %134 = vmax.xlane.f32.xlu0 %v133_v39  ;;  %v124_v40 = vpop.xlane.xlu2 %123  ;;  %v1174_v39 = vld [vmem:[%s1711_s5 + $0xc] sm:$0xf] }
 0x1f7   :  { %v125_v42 = vcvt.f32.s32 %v124_v40  ;;  %v1007_v40 = vld [vmem:[%s1711_s5 + $0x18] sm:$0xf0] }
 0x1f9   :  { %v1392_v43 = vadd.s32 %v127_v41, %v125_v42  ;;  %v1010_v41 = vor.u32 %v1174_v39, %v1007_v40  ;;  %v985_v42 = vld [vmem:[%s1709_s3 + $0x28] sm:$0xf] }
 0x1fb   :  { %vm130_vm7 = vcmp.eq.s32.totalorder %v1375_v13, %v1392_v43  ;;  %438 = vmatpush.bf16.msra.mxu0 %v1010_v41  ;;  %v1188_v43 = vld [vmem:[%s1713_s7 + $0x38] sm:$0xff]  ;;  %v1207_v41 = vld [vmem:[%s1713_s7 + $0xd0] sm:$0xff] }
 0x1fc   :  { %v132_v44 = vsel %vm130_vm7, -inf, %v1366_v10 }
 0x1fd   :  { %v136_v45 = vsel %vm84_vm1, %v132_v44, -inf }
 0x1fe   :  { %137 = vmax.xlane.f32.xlu1 %v136_v45  ;;  %1030 = vmatmul.msk.bf16.vlgmr.msra.gmra.mxu0 %vm66_vm0, %v1350_v4 }
 0x269   :  { %v135_v46 = vpop.xlane.xlu0 %134 }
 0x26a   :  { %vm139_vm8 = vcmp.eq.f32.partialorder %v131_v38, %v135_v46  ;;  %v181_v38 = vld [vmem:[%s1714_s8] sm:$0xff]  ;;  %v969_v46 = vld [vmem:[%s1709_s3 + $0x8] sm:$0xf] }
 0x26b   :  { %v141_v47 = vsel %vm139_vm8, %v1375_v13, 8  ;;  %203 = vmatpush.msra.mxu1 %v181_v38  ;;  %v224_v38 = vperm.slane %v1585_v31, 1 }
 0x26c   :  { %v143_v48 = vsel %vm84_vm1, %v141_v47, 2147483647  ;;  %v1168_v47 = vld [vmem:[%s1709_s3 + $0x14] sm:$0xf0] }
 0x26d   :  { %v145_v49 = vshra.s32 %v143_v48, 16  ;;  %v144_v20 = vand.u32 65535, %v143_v48  ;;  %v504_v48 = vld [vmem:[%s1715_s9] sm:$0xff] }
 0x26f   :  { %v147_v50 = vcvt.s32.f32 %v145_v49  ;;  %v146_v22 = vcvt.s32.f32 %v144_v20  ;;  %v970_v49 = vor.u32 %v1168_v47, %v969_v46  ;;  %v300_v46 = vpop.f32.mrf.mxu3  ;;  %v1184_v47 = vld [vmem:[%s1713_s7 + $0x18] sm:$0xff] }
 0x271   :  { %v138_v51 = vpop.xlane.xlu1 %137  ;;  %148 = vmin.xlane.f32.xlu2 %v147_v50 }
 0x272   :  { %vm140_vm9 = vcmp.eq.f32.partialorder %v132_v44, %v138_v51  ;;  %v1172_v44 = vld [vmem:[%s1709_s3 + $0x34] sm:$0xf0]  ;;  %v509_v51 = vunpack.c.h.b16 %v504_v48 }
 0x273   :  { %v142_v52 = vsel %vm140_vm9, %v1375_v13, 8  ;;  %v986_v45 = vor.u32 %v1172_v44, %v985_v42 }
 0x274   :  { %v158_v53 = vsel %vm84_vm1, %v142_v52, 2147483647  ;;  %v505_v52 = vld [vmem:[%s1715_s9 + $0x8] sm:$0xff] }
 0x275   :  { %v160_v54 = vshra.s32 %v158_v53, 16  ;;  %v159_v24 = vand.u32 65535, %v158_v53  ;;  %309 = vmatpush.bf16.msrb.mxu1 %v986_v45  ;;  %v511_v53 = vunpack.c.h.b16 %v505_v52  ;;  %v510_v16 = vunpack.c.l.b16 %v505_v52  ;;  %v1206_v52 = vld [vmem:[%s1713_s7 + $0xc8] sm:$0xff] }
 0x277   :  { %v162_v55 = vcvt.s32.f32 %v160_v54  ;;  %v161_v26 = vcvt.s32.f32 %v159_v24  ;;  %v515_v56 = vpack.c.b16 %v511_v53, %v511_v53  ;;  %v514_v17 = vpack.c.b16 %v510_v16, %v510_v16  ;;  %v1187_v24 = vld [vmem:[%s1713_s7 + $0x30] sm:$0xff]  ;;  %v1202_v16 = vld [vmem:[%s1713_s7 + $0xa8] sm:$0xff] }
 0x278   :  { %v1622_v53 = vadd.f32 %v300_v46, %v224_v38 }
 0x279   :  { %163 = vmin.xlane.f32.xlu0 %v162_v55  ;;  %310 = vmatpush.bf16.msrb.mxu1 %v970_v49  ;;  %v531_v59 = vsel %vm520_vm12, %v515_v56, 0  ;;  %v528_v18 = vsel %vm520_vm12, %v514_v17, 0  ;;  %v1614_v49 = vadd.f32 %v298_v28, %v224_v38  ;;  %v1183_v56 = vld [vmem:[%s1713_s7 + $0x10] sm:$0xff]  ;;  %v225_v28 = vperm.slane %v1585_v31, 2 }
 0x27a   :  { %582 = vmatpush.bf16.msrb.mxu0 %v531_v59  ;;  %v1199_v38 = vld [vmem:[%s1713_s7 + $0x90] sm:$0xff] }
 0x2e4   :  { %v149_v21 = vpop.xlane.xlu2 %148 }
 0x2e5   :  { %vm150_vm10 = vcmp.eq.f32.partialorder %v147_v50, %v149_v21  ;;  %v508_v50 = vunpack.c.l.b16 %v504_v48  ;;  %v155_v60 = vcvt.f32.s32 %v149_v21  ;;  %v1192_v48 = vld [vmem:[%s1713_s7 + $0x58] sm:$0xff] }
 0x2e6   :  { %v151_v23 = vsel %vm150_vm10, %v146_v22, inf  ;;  %v1196_v22 = vld [vmem:[%s1713_s7 + $0x78] sm:$0xff] }
 0x2e7   :  { %152 = vmin.xlane.f32.xlu1 %v151_v23  ;;  %v512_v54 = vpack.c.b16 %v508_v50, %v508_v50  ;;  %v156_v62 = vshll.u32 %v155_v60, 16  ;;  %v326_v23 = vpop.f32.mrf.mxu0 }
 0x2e8   :  { %v1599_v39 = vadd.f32 %v326_v23, %v226_v32 }
 0x2e9   :  { %v522_v57 = vsel %vm520_vm12, %v512_v54, 0 }
 0x2ea   :  { %540 = vmatpush.bf16.msra.mxu2 %v522_v57  ;;  %v448_v50 = vsub.f32 0.0, %v1599_v39  ;;  %v1191_v57 = vld [vmem:[%s1713_s7 + $0x50] sm:$0xff] }
 0x2ec   :  { %v1459_v25 = vpop.xlane.xlu0 %163  ;;  %v459_v59 = vmul.f32 1.442695, %v448_v50  ;;  %v1198_v50 = vld [vmem:[%s1713_s7 + $0x88] sm:$0xff] }
 0x2ed   :  { %vm165_vm11 = vcmp.eq.f32.partialorder %v162_v55, %v1459_v25  ;;  %v513_v55 = vpack.c.b16 %v509_v51, %v509_v51  ;;  %v170_v3 = vcvt.f32.s32 %v1459_v25  ;;  %v1195_v25 = vld [vmem:[%s1713_s7 + $0x70] sm:$0xff] }
 0x2ee   :  { %v166_v27 = vsel %vm165_vm11, %v161_v26, inf  ;;  %859 = vmatpush.bf16.msrb.mxu2 %v1188_v43  ;;  %v1209_v26 = vld [vmem:[%s1713_s7 + $0xe0] sm:$0xff]  ;;  %1217 = vpow2.f32 %v459_v59 }
 0x2ef   :  { %167 = vmin.xlane.f32.xlu2 %v166_v27  ;;  %v525_v58 = vsel %vm520_vm12, %v513_v55, 0  ;;  %v171_v12 = vshll.u32 %v170_v3, 16  ;;  %v284_v27 = vpop.f32.mrf.mxu2  ;;  %v328_v40 = vpop.f32.mrf.mxu0  ;;  %v1204_v3 = vld [vmem:[%s1713_s7 + $0xb8] sm:$0xff] }
 0x2f0   :  { %554 = vmatpush.bf16.msra.mxu3 %v525_v58  ;;  %v1604_v44 = vadd.f32 %v328_v40, %v226_v32  ;;  %v1606_v45 = vadd.f32 %v284_v27, %v223_v34  ;;  %v446_v58 = vsub.f32 0.0, %v1614_v49 }
 0x2f2   :  { %860 = vmatpush.bf16.msrb.mxu2 %v1187_v24  ;;  %v452_v54 = vsub.f32 0.0, %v1604_v44  ;;  %v445_v55 = vsub.f32 0.0, %v1606_v45 }
 0x2f4   :  { %873 = vmatpush.bf16.msrb.mxu3 %v1196_v22  ;;  %v453_v0 = vmul.f32 1.442695, %v445_v55 }
 0x2f6   :  { %861 = vmatpush.bf16.msrb.mxu2 %v1186_v29  ;;  %v1200_v29 = vld [vmem:[%s1713_s7 + $0x98] sm:$0xff] }
 0x2f7   :  { %v286_v42 = vpop.f32.mrf.mxu2  ;;  %v440_v8 = vpop.f32.mrf.mxu0 }
 0x2f8   :  { %874 = vmatpush.bf16.msrb.mxu3 %v1195_v25  ;;  %v1617_v51 = vadd.f32 %v286_v42, %v223_v34 }
 0x2fa   :  { %862 = vmatpush.bf16.msrb.mxu2 %v1185_v35  ;;  %v449_v60 = vsub.f32 0.0, %v1617_v51 }
 0x2fc   :  { %875 = vmatpush.bf16.msrb.mxu3 %v1194_v30  ;;  %v461_v6 = vmul.f32 1.442695, %v449_v60  ;;  %v1673_v30 = vld [vmem:[%s1712_s6] sm:$0xf] }
 0x2fd   :  { %v344_v32 = vperm.slane %v1673_v30, 3  ;;  %v342_v59 = vperm.slane %v1673_v30, 1 }
 0x2fe   :  { %863 = vmatpush.bf16.msrb.mxu2 %v1184_v47 }
 0x2ff   :  { %v1660_v17 = vpop.f32.mrf.mxu2  ;;  %v442_v22 = vpop.f32.mrf.mxu0  ;;  %v441_v47 = vadd.f32 %v440_v8, %v344_v32 }
 0x300   :  { %876 = vmatpush.bf16.msrb.mxu3 %v1193_v37 }
 0x302   :  { %864 = vmatpush.bf16.msrb.mxu2 %v1183_v56  ;;  %v443_v56 = vadd.f32 %v442_v22, %v344_v32 }
 0x304   :  { %877 = vmatpush.bf16.msrb.mxu3 %v1192_v48 }
 0x306   :  { %865 = vmatpush.bf16.msrb.mxu2 %v1182_v1 }
 0x308   :  { %878 = vmatpush.bf16.msrb.mxu3 %v1191_v57 }
 0x35a   :  { %v153_v61 = vpop.xlane.xlu1 %152 }
 0x35b   :  { %v154_v63 = vcvt.f32.s32 %v153_v61  ;;  %v1205_v61 = vld [vmem:[%s1713_s7 + $0xc0] sm:$0xff] }
 0x35d   :  { %v157_v2 = vadd.s32 %v156_v62, %v154_v63  ;;  %v450_v62 = vsub.f32 0.0, %v1622_v53  ;;  %v467_v63 = vmul.f32 1.442695, %v452_v54 }
 0x35f   :  { %vm173_vm13 = vcmp.eq.s32.totalorder %v1375_v13, %v157_v2  ;;  %v1190_v2 = vld [vmem:[%s1713_s7 + $0x48] sm:$0xff]  ;;  %1219 = vpow2.f32 %v467_v63 }
 0x360   :  { %vm175_vm14 = vmor %vm129_vm6, %vm173_vm13  ;;  %879 = vmatpush.bf16.msrb.mxu3 %v1190_v2  ;;  %1221 = vpow2.f32 %v453_v0  ;;  %v1197_v2 = vld [vmem:[%s1713_s7 + $0x80] sm:$0xff] }
 0x361   :  { %v177_v9 = vsel %vm175_vm14, %v1357_v7, 0.0 }
 0x362   :  { %179 = vst.msk [vmem:[#allocation2] sm:$0xff] %vm84_vm1, %v177_v9  ;;  %957 = vmatmul.msk.f32.vlgmr.msra.gmra.mxu1 %vm84_vm1, %v177_v9  ;;  %v168_v11 = vpop.xlane.xlu2 %167  ;;  %v463_v9 = vmul.f32 1.442695, %v450_v62 }
 0x363   :  { %v169_v14 = vcvt.f32.s32 %v168_v11  ;;  %423 = vmatpush.bf16.msra.mxu1 %v1022_v5  ;;  %v455_v5 = vmul.f32 1.442695, %v446_v58  ;;  %v341_v58 = vperm.slane %v1673_v30, 0 }
 0x365   :  { %v172_v15 = vadd.s32 %v171_v12, %v169_v14  ;;  %v1181_v12 = vld [vmem:[%s1713_s7] sm:$0xff]  ;;  %1223 = vpow2.f32 %v455_v5  ;;  %v399_v8 = vadd.f32 %v1660_v17, %v341_v58 }
 0x366   :  { %v1189_v14 = vld [vmem:[%s1713_s7 + $0x40] sm:$0xff]  ;;  %1225 = vpow2.f32 %v461_v6  ;;  %866 = vmatpush.bf16.msrb.mxu2 %v1181_v12 }
 0x367   :  { %vm174_vm15 = vcmp.eq.s32.totalorder %v1375_v13, %v172_v15  ;;  %424 = vmatpush.bf16.msra.mxu1 %v1006_v36  ;;  %v1211_v13 = vld [vmem:[%s1713_s7 + $0xf0] sm:$0xff]  ;;  %880 = vmatpush.bf16.msrb.mxu3 %v1189_v14  ;;  %v1218_v15 = vpop.eup %1217  ;;  %1227 = vpow2.f32 %v463_v9 }
 0x368   :  { %vm176_vm2 = vmor %vm130_vm7, %vm174_vm15  ;;  %v1203_v36 = vld [vmem:[%s1713_s7 + $0xb0] sm:$0xff] }
 0x369   :  { %v178_v7 = vsel %vm176_vm2, %v1366_v10, 0.0  ;;  %v501_v19 = vld [vmem:[#allocation2] sm:$0xff]  ;;  %v1212_v10 = vld [vmem:[%s1713_s7 + $0xf8] sm:$0xff] }
 0x36a   :  { %180 = vst.msk [vmem:[#allocation2 + $0x8] sm:$0xff] %vm84_vm1, %v178_v7  ;;  %958 = vmatmul.msk.f32.gmra.mxu1 %vm84_vm1, %v178_v7  ;;  %901 = vmatpush.bf16.msra.mxu0 %v1212_v10  ;;  %v1220_v7 = vpop.eup %1219 }
 0x36b   :  { %v476_v43 = vadd.f32 1.0, %v1220_v7 }
 0x36e   :  { %902 = vmatpush.bf16.msra.mxu0 %v1211_v13 }
 0x371   :  { %v502_v20 = vld [vmem:[#allocation2 + $0x8] sm:$0xff] }
 0x372   :  { %993 = vmatmul.msk.bf16.vlgmr.msrb.gmra.mxu1 %vm66_vm0, %v1350_v4  ;;  %v503_v21 = vpack.c.bf16 %v502_v20, %v501_v19  ;;  %v472_v19 = vadd.f32 1.0, %v1218_v15  ;;  %v412_v20 = vpop.f32.mrf.mxu3 }
 0x373   :  { %568 = vmatpush.bf16.msrb.mxu1 %v528_v18  ;;  %v1222_v18 = vpop.eup %1221  ;;  %v413_v9 = vadd.f32 %v412_v20, %v342_v59 }
 0x374   :  { %1031 = vmatmul.msk.bf16.vlgmr.msra.gmra.mxu2 %vm84_vm1, %v503_v21  ;;  %1032 = vmatmul.msk.bf16.vlgmr.msra.gmra.mxu3 %vm84_vm1, %v503_v21  ;;  %v469_v24 = vadd.f32 1.0, %v1222_v18  ;;  %1229 = vrcp.f32 %v472_v19 }
 0x375   :  { %1034 = vmatmul.msk.bf16.vlgmr.msrb.gmra.mxu0 %vm84_vm1, %v503_v21  ;;  %1231 = vrcp.f32 %v476_v43 }
 0x376   :  { %1233 = vrcp.f32 %v469_v24 }
 0x37a   :  { %v414_v31 = vpop.f32.mrf.mxu3 }
 0x382   :  { %1029 = vmatmul.msk.bf16.vlgmr.msra.gmra.mxu1 %vm66_vm0, %v1350_v4  ;;  %v1210_v4 = vld [vmem:[%s1713_s7 + $0xe8] sm:$0xff] }
 0x383   :  { %903 = vmatpush.bf16.msra.mxu0 %v1210_v4  ;;  %887 = vmatpush.bf16.msra.mxu1 %v1204_v3  ;;  %v1201_v4 = vld [vmem:[%s1713_s7 + $0xa0] sm:$0xff]  ;;  %s1275_s7 = smov [#allocation4]  }
 0x384   :  { %s930_s15 = sshll.u32 %s1275_s7, 4  ;;  %s931_s15 = int_to_ptr.vmem [resolvable:$true] %s930_s15 }
 0x387   :  { %904 = vmatpush.bf16.msra.mxu0 %v1209_v26  ;;  %888 = vmatpush.bf16.msra.mxu1 %v1203_v36 }
 0x38b   :  { %905 = vmatpush.bf16.msra.mxu0 %v1208_v33  ;;  %889 = vmatpush.bf16.msra.mxu1 %v1202_v16  ;;  %v400_v33 = vpop.f32.mrf.mxu2 }
 0x38f   :  { %906 = vmatpush.bf16.msra.mxu0 %v1207_v41  ;;  %890 = vmatpush.bf16.msra.mxu1 %v1201_v4 }
 0x392   :  { %1033 = vmatmul.msk.bf16.vlgmr.msrb.gmra.mxu1 %vm84_vm1, %v503_v21  ;;  %v1224_v21 = vpop.eup %1223 }
 0x393   :  { %907 = vmatpush.bf16.msra.mxu0 %v1206_v52  ;;  %v1226_v13 = vpop.eup %1225  ;;  %v470_v25 = vadd.f32 1.0, %v1224_v21  ;;  %891 = vmatpush.bf16.msra.mxu1 %v1200_v29 }
 0x394   :  { %v1228_v23 = vpop.eup %1227  ;;  %v473_v26 = vadd.f32 1.0, %v1226_v13 }
 0x395   :  { %v474_v27 = vadd.f32 1.0, %v1228_v23  ;;  %1235 = vrcp.f32 %v470_v25  ;;  %v1230_v35 = vpop.eup %1229 }
 0x396   :  { %1237 = vrcp.f32 %v473_v26  ;;  %v1232_v40 = vpop.eup %1231  ;;  %v488_v46 = vmul.f32 %v1230_v35, %v1599_v39 }
 0x397   :  { %908 = vmatpush.bf16.msra.mxu0 %v1205_v61  ;;  %1239 = vrcp.f32 %v474_v27  ;;  %v1234_v42 = vpop.eup %1233  ;;  %892 = vmatpush.bf16.msra.mxu1 %v1199_v38  ;;  %v492_v55 = vmul.f32 %v1232_v40, %v1604_v44 }
 0x398   :  { %v496_v39 = vmul.f32 %v488_v46, %v441_v47  ;;  %v485_v63 = vmul.f32 %v1234_v42, %v1606_v45  ;;  %v415_v45 = vadd.f32 %v414_v31, %v342_v59 }
 0x399   :  { %v500_v6 = vmul.f32 %v492_v55, %v443_v56 }
 0x39b   :  { %v1236_v52 = vpop.eup %1235  ;;  %893 = vmatpush.bf16.msra.mxu1 %v1198_v50 }
 0x39c   :  { %v1238_v54 = vpop.eup %1237  ;;  %v486_v44 = vmul.f32 %v1236_v52, %v1614_v49  ;;  %v493_v49 = vmul.f32 %v485_v63, %v399_v8 }
 0x39d   :  { %v1240_v57 = vpop.eup %1239  ;;  %v489_v3 = vmul.f32 %v1238_v54, %v1617_v51 }
 0x39e   :  { %v490_v5 = vmul.f32 %v1240_v57, %v1622_v53  ;;  %v494_v51 = vmul.f32 %v486_v44, %v413_v9 }
 0x39f   :  { %894 = vmatpush.bf16.msra.mxu1 %v1197_v2 }
 0x3a0   :  { %v498_v21 = vmul.f32 %v490_v5, %v415_v45 }
 0x3df   :  { %v205_v11 = vpop.f32.mrf.mxu1 }
 0x3e0   :  { %211 = vst.msk [vmem:[#allocation3] sm:$0xff] %vm66_vm0, %v205_v11  ;;  %v401_v11 = vadd.f32 %v400_v33, %v341_v58  ;;  %v343_v33 = vperm.slane %v1673_v30, 2 }
 0x3e2   :  { %v497_v18 = vmul.f32 %v489_v3, %v401_v11 }
 0x3e7   :  { %v208_v10 = vpop.f32.mrf.mxu1 }
 0x3e8   :  { %212 = vst.msk [vmem:[#allocation3 + $0x8] sm:$0xff] %vm66_vm0, %v208_v10 }
 0x3ef   :  { %v312_v34 = vpop.f32.mrf.mxu1 }
 0x3f0   :  { %v1676_v37 = vadd.f32 %v312_v34, %v225_v28 }
 0x3f2   :  { %v584_v41 = vpop.f32.mrf.mxu0  ;;  %v447_v48 = vsub.f32 0.0, %v1676_v37 }
 0x3f3   :  { %v594_v36 = vmul.f32 %v584_v41, %v496_v39 }
 0x3f4   :  { %v457_v60 = vmul.f32 1.442695, %v447_v48 }
 0x3f6   :  { %1241 = vpow2.f32 %v457_v60 }
 0x3f7   :  { %v314_v61 = vpop.f32.mrf.mxu1  ;;  %v542_v62 = vpop.f32.mrf.mxu2 }
 0x3f8   :  { %v315_v0 = vadd.f32 %v314_v61, %v225_v28  ;;  %v556_v1 = vpop.f32.mrf.mxu3  ;;  %v591_v17 = vmul.f32 %v542_v62, %v493_v49 }
 0x3f9   :  { %v592_v43 = vmul.f32 %v556_v1, %v494_v51  ;;  %v590_v1 = vld [vmem:[#allocation3 + $0x8] sm:$0xff] }
 0x3fa   :  { %v451_v12 = vsub.f32 0.0, %v315_v0  ;;  %v586_v14 = vpop.f32.mrf.mxu0 }
 0x3fb   :  { %v598_v15 = vmul.f32 %v586_v14, %v500_v6 }
 0x3fc   :  { %v465_v16 = vmul.f32 1.442695, %v451_v12  ;;  %v1242_v13 = vpop.eup %1241 }
 0x3fd   :  { %v602_v7 = vpack.c.bf16 %v598_v15, %v594_v36  ;;  %v471_v25 = vadd.f32 1.0, %v1242_v13 }
 0x3fe   :  { %1243 = vpow2.f32 %v465_v16 }
 0x3ff   :  { %909 = vmatmul.bf16.vlgmr.msra.gmra.mxu0 %v602_v7  ;;  %v426_v53 = vpop.f32.mrf.mxu1  ;;  %v544_v19 = vpop.f32.mrf.mxu2  ;;  %1245 = vrcp.f32 %v471_v25 }
 0x400   :  { %v595_v20 = vmul.f32 %v544_v19, %v497_v18  ;;  %v558_v10 = vpop.f32.mrf.mxu3  ;;  %v427_v31 = vadd.f32 %v426_v53, %v343_v33 }
 0x401   :  { %v596_v22 = vmul.f32 %v558_v10, %v498_v21 }
 0x402   :  { %v599_v4 = vpack.c.bf16 %v595_v20, %v591_v17 }
 0x403   :  { %v600_v23 = vpack.c.bf16 %v596_v22, %v592_v43 }
 0x404   :  { %v1244_v24 = vpop.eup %1243  ;;  %867 = vmatmul.bf16.vlgmr.msrb.gmra.mxu2 %v599_v4 }
 0x405   :  { %v475_v26 = vadd.f32 1.0, %v1244_v24  ;;  %881 = vmatmul.bf16.vlgmr.msrb.gmra.mxu3 %v600_v23  ;;  %v1246_v28 = vpop.eup %1245 }
 0x406   :  { %v487_v34 = vmul.f32 %v1246_v28, %v1676_v37  ;;  %v589_v37 = vld [vmem:[#allocation3] sm:$0xff] }
 0x407   :  { %v428_v27 = vpop.f32.mrf.mxu1  ;;  %1247 = vrcp.f32 %v475_v26 }
 0x408   :  { %v429_v38 = vadd.f32 %v428_v27, %v343_v33  ;;  %v495_v40 = vmul.f32 %v487_v34, %v427_v31 }
 0x40d   :  { %v1248_v29 = vpop.eup %1247 }
 0x40e   :  { %v491_v35 = vmul.f32 %v1248_v29, %v315_v0 }
 0x40f   :  { %v570_v32 = vpop.f32.mrf.mxu1 }
 0x410   :  { %v499_v41 = vmul.f32 %v491_v35, %v429_v38  ;;  %v593_v46 = vmul.f32 %v570_v32, %v495_v40 }
 0x417   :  { %v572_v42 = vpop.f32.mrf.mxu1 }
 0x418   :  { %v597_v47 = vmul.f32 %v572_v42, %v499_v41 }
 0x41a   :  { %v601_v48 = vpack.c.bf16 %v597_v47, %v593_v46 }
 0x41c   :  { %895 = vmatmul.bf16.vlgmr.msra.gmra.mxu1 %v601_v48 }
 0x47c   :  { %v910_v55 = vpop.f32.mrf.mxu0 }
 0x484   :  { %v912_v63 = vpop.f32.mrf.mxu0 }
 0x487   :  { %v868_v50 = vpop.f32.mrf.mxu2 }
 0x488   :  { %v882_v52 = vpop.f32.mrf.mxu3 }
 0x489   :  { %v883_v54 = vadd.f32 %v882_v52, %v868_v50 }
 0x48f   :  { %v870_v30 = vpop.f32.mrf.mxu2 }
 0x490   :  { %v884_v59 = vpop.f32.mrf.mxu3 }
 0x491   :  { %v885_v39 = vadd.f32 %v884_v59, %v870_v30 }
 0x499   :  { %v896_v56 = vpop.f32.mrf.mxu1 }
 0x49a   :  { %v897_v57 = vadd.f32 %v896_v56, %v883_v54 }
 0x49c   :  { %v911_v58 = vadd.f32 %v910_v55, %v897_v57 }
 0x49e   :  { %v915_v60 = vadd.f32 %v911_v58, %v589_v37 }
 0x4a0   :  { %917 = vst.msk [vmem:[#allocation3] sm:$0xff] %vm66_vm0, %v915_v60 }
 0x4a1   :  { %v898_v61 = vpop.f32.mrf.mxu1 }
 0x4a2   :  { %v899_v62 = vadd.f32 %v898_v61, %v885_v39 }
 0x4a4   :  { %v913_v0 = vadd.f32 %v912_v63, %v899_v62 }
 0x4a6   :  { %v916_v2 = vadd.f32 %v913_v0, %v590_v1 }
 0x4a7   :  { %v922_v44 = vld [vmem:[#allocation3] sm:$0xff] }
 0x4a8   :  { %918 = vst.msk [vmem:[#allocation3 + $0x8] sm:$0xff] %vm66_vm0, %v916_v2 }
 0x4a9   :  { %924 = vst.msk [vmem:[#allocation4] sm:$0xff] %vm66_vm0, %v922_v44 }
 0x4af   :  { %v923_v3 = vld [vmem:[#allocation3 + $0x8] sm:$0xff] }
 0x4b0   :  { %925 = vst.msk [vmem:[#allocation4 + $0x8] sm:$0xff] %vm66_vm0, %v923_v3 }
 0x4b1   :  { %938 = dma.vmem_to_hbm [thread:$0]  %s931_s15, 256, %s933_s18, [#allocation5], %s1276_s19, %s1276_s19, %s1277_s20  }
 0x4b2   :  { %1273 = dma.done.wait [#allocation5], 256  }
 0x4b3   :  { %1274 = vsyncadd [#allocation5], 4294967040 }
 0x4b4   :  { %947 = vsyncpa [#allocation5], 1 }

</bundles_post_ra>
